<compile_context>
chip_gen: v5e
topology: v5e:2x2
jax: 0.10.0
libtpu: 0.0.40
codegen_flags: <defaults>
</compile_context>

<pallas_src>
import functools

import jax
import jax.numpy as jnp
from jax import lax
from jax.experimental import pallas as pl
from jax.experimental.pallas import tpu as pltpu

_EPS = 1e-5  # nn.InstanceNorm2d default eps
_VMEM_BLOCK_BUDGET = 24 * 1024 * 1024   # bytes for 2x input + 2x output buffers
_VMEM_LIMIT_BYTES = 48 * 1024 * 1024    # raise scoped VMEM, still < v7x 64 MiB physical


def _round_up(x, m):
    return ((x + m - 1) // m) * m


def _instance_norm_kernel(x_ref, gb_ref, o_ref, *, hw, hw_pad):
    """One block = (rows_tile, hw_pad). Normalize each row over its (real) H*W."""
    x = x_ref[...].astype(jnp.float32)                       # (tr, hw_pad)
    inv_n = jnp.float32(1.0 / hw)

    if hw == hw_pad:
        mean = jnp.sum(x, axis=-1, keepdims=True) * inv_n    # (tr, 1)
        centered = x - mean
        var = jnp.sum(centered * centered, axis=-1, keepdims=True) * inv_n
    else:
        # Padded columns are zero, so the sum is already correct for the mean;
        # mask them out of the variance so (0 - mean)^2 doesn't pollute it.
        col = lax.broadcasted_iota(jnp.int32, x.shape, 1)
        mask = col < hw
        mean = jnp.sum(x, axis=-1, keepdims=True) * inv_n
        centered = jnp.where(mask, x - mean, 0.0)
        var = jnp.sum(centered * centered, axis=-1, keepdims=True) * inv_n

    inv_std = lax.rsqrt(var + _EPS)                          # (tr, 1)
    gb = gb_ref[...].astype(jnp.float32)                     # (tr, 2): [gamma, beta]
    scale = inv_std * gb[:, 0:1]
    bias = gb[:, 1:2] - mean * scale
    # Single fused elementwise write: 1 mul + 1 add per element.
    o_ref[...] = (x * scale + bias).astype(o_ref.dtype)


def _choose_rows_tile(nc, hw_pad, itemsize):
    """Largest row tile (multiple of 8) whose in+out double-buffered blocks fit
    the VMEM budget, while keeping >= 2 grid steps when the problem allows."""
    bytes_per_row = 4 * hw_pad * max(int(itemsize), 4)       # 2x in + 2x out, f32 upper bound
    max_rows = max(8, _VMEM_BLOCK_BUDGET // bytes_per_row)
    rows_tile = int(min(max_rows, 2048))
    rows_tile = max(8, (rows_tile // 8) * 8)

    nc_ceil8 = _round_up(nc, 8)
    if rows_tile >= nc_ceil8:
        if nc_ceil8 > 8:
            # Whole problem would fit a single block; split into >= 2 grid
            # steps so the 'parallel' axis can use both v7x TensorCores.
            rows_tile = max(8, ((nc_ceil8 // 2) // 8) * 8)
        else:
            rows_tile = nc_ceil8
    return rows_tile


def instance_norm_2d(x, gamma, beta):
    """InstanceNorm2d(affine=True) forward.  x: (N, C, H, W); gamma, beta: (C,)."""
    N, C, H, W = x.shape
    NC, HW = N * C, H * W
    hw_pad = _round_up(HW, 128)

    rows_tile = _choose_rows_tile(NC, hw_pad, jnp.dtype(x.dtype).itemsize)
    nc_pad = _round_up(NC, rows_tile)
    grid = (nc_pad // rows_tile,)

    x2 = x.reshape(NC, HW)
    pad_rows, pad_cols = nc_pad - NC, hw_pad - HW
    if pad_rows or pad_cols:
        x2 = jnp.pad(x2, ((0, pad_rows), (0, pad_cols)))

    # Per-row affine params packed as (NC_pad, 2): one small DMA per grid step.
    g_rows = jnp.tile(gamma.astype(jnp.float32), N)
    b_rows = jnp.tile(beta.astype(jnp.float32), N)
    gb = jnp.stack([g_rows, b_rows], axis=1)                 # (NC, 2)
    if pad_rows:
        gb = jnp.pad(gb, ((0, pad_rows), (0, 0)))            # padded rows: scale/bias -> 0

    kernel = functools.partial(_instance_norm_kernel, hw=HW, hw_pad=hw_pad)

    total = NC * HW
    cost = pl.CostEstimate(
        flops=6 * total,
        transcendentals=NC,
        bytes_accessed=int(2 * total * jnp.dtype(x.dtype).itemsize + NC * 8),
    )

    out2 = pl.pallas_call(
        kernel,
        out_shape=jax.ShapeDtypeStruct((nc_pad, hw_pad), x.dtype),
        grid_spec=pltpu.PrefetchScalarGridSpec(
            num_scalar_prefetch=0,
            grid=grid,
            in_specs=[
                pl.BlockSpec((rows_tile, hw_pad), lambda i: (i, 0)),
                pl.BlockSpec((rows_tile, 2), lambda i: (i, 0)),
            ],
            out_specs=pl.BlockSpec((rows_tile, hw_pad), lambda i: (i, 0)),
        ),
        compiler_params=pltpu.CompilerParams(
            dimension_semantics=("parallel",),
            vmem_limit_bytes=_VMEM_LIMIT_BYTES,
        ),
        cost_estimate=cost,
    )(x2, gb)

    if pad_rows or pad_cols:
        out2 = out2[:NC, :HW]
    return out2.reshape(N, C, H, W)


class InstanceNormModule:
    """Mirrors the PyTorch `InstanceNorm` module: holds two affine InstanceNorm2d
    parameter sets ('1' -> in_channels, '2' -> 20); forward() returns the
    selected norm as a callable."""

    def __init__(self, layer, in_channels, key=None):
        self.layer = layer
        if key is None:
            key = jax.random.PRNGKey(0)
        k1, k2, k3, k4 = jax.random.split(key, 4)
        # PyTorch default init is ones/zeros; perturb so the affine path is exercised.
        self.params = {
            "1": (
                jnp.ones((in_channels,), jnp.float32)
                + 0.1 * jax.random.normal(k1, (in_channels,), jnp.float32),
                0.1 * jax.random.normal(k2, (in_channels,), jnp.float32),
            ),
            "2": (
                jnp.ones((20,), jnp.float32)
                + 0.1 * jax.random.normal(k3, (20,), jnp.float32),
                0.1 * jax.random.normal(k4, (20,), jnp.float32),
            ),
        }

    def forward(self):
        gamma, beta = self.params[self.layer]
        return functools.partial(instance_norm_2d, gamma=gamma, beta=beta)

    __call__ = forward


def _reference_instance_norm(x, gamma, beta):
    xf = x.astype(jnp.float32)
    mean = xf.mean(axis=(2, 3), keepdims=True)
    var = xf.var(axis=(2, 3), keepdims=True)  # biased, like PyTorch
    y = (xf - mean) / jnp.sqrt(var + _EPS)
    return (y * gamma[None, :, None, None] + beta[None, :, None, None]).astype(x.dtype)


if __name__ == "__main__":
    key = jax.random.PRNGKey(0)
    kx, kp = jax.random.split(key)

    N, C, H, W = 2, 4, 16, 16
    x = jax.random.normal(kx, (N, C, H, W), jnp.float32)

    module = InstanceNormModule(layer="1", in_channels=C, key=kp)
    norm_fn = module()          # forward() returns the selected instance norm
    out = norm_fn(x)            # apply it, like in1(x) in PyTorch usage
    out = jax.block_until_ready(out)

    gamma, beta = module.params["1"]
    ref = _reference_instance_norm(x, gamma, beta)
    assert out.shape == x.shape and out.dtype == x.dtype
    assert jnp.allclose(out, ref, atol=1e-4, rtol=1e-4), "mismatch vs reference"

    print("KERNEL_OK")
</pallas_src>

<mosaic_0001>
module attributes {stable_mosaic.version = 11 : i64} {
  func.func @_instance_norm_kernel(%arg0: i32, %arg1: memref<8x256xf32, #tpu.memory_space<vmem>>, %arg2: memref<8x2xf32, #tpu.memory_space<vmem>>, %arg3: memref<8x256xf32, #tpu.memory_space<vmem>>) attributes {dimension_semantics = [#tpu.dimension_semantics<parallel>], iteration_bounds = array<i64: 1>, scalar_prefetch = 0 : i64, scratch_operands = 0 : i64, tpu.core_type = #tpu.core_type<tc>, window_params = [{transform_indices = @transform_0, window_bounds = array<i64: 8, 256>}, {transform_indices = @transform_1, window_bounds = array<i64: 8, 2>}, {transform_indices = @transform_2, window_bounds = array<i64: 8, 256>}]} {
    %c0 = arith.constant 0 : index
    %c0_0 = arith.constant 0 : index
    %0 = vector.load %arg1[%c0, %c0_0] : memref<8x256xf32, #tpu.memory_space<vmem>>, vector<8x256xf32>
    %cst = arith.constant dense<0.000000e+00> : vector<8xf32>
    %1 = vector.multi_reduction <add>, %0, %cst [1] : vector<8x256xf32> to vector<8xf32>
    %2 = vector.shape_cast %1 : vector<8xf32> to vector<8x1xf32>
    %cst_1 = arith.constant 3.906250e-03 : f32
    %3 = vector.broadcast %cst_1 : f32 to vector<8x1xf32>
    %4 = arith.mulf %2, %3 : vector<8x1xf32>
    %5 = vector.broadcast %4 : vector<8x1xf32> to vector<8x256xf32>
    %6 = arith.subf %0, %5 : vector<8x256xf32>
    %7 = arith.mulf %6, %6 : vector<8x256xf32>
    %cst_2 = arith.constant dense<0.000000e+00> : vector<8xf32>
    %8 = vector.multi_reduction <add>, %7, %cst_2 [1] : vector<8x256xf32> to vector<8xf32>
    %9 = vector.shape_cast %8 : vector<8xf32> to vector<8x1xf32>
    %cst_3 = arith.constant 3.906250e-03 : f32
    %10 = vector.broadcast %cst_3 : f32 to vector<8x1xf32>
    %11 = arith.mulf %9, %10 : vector<8x1xf32>
    %cst_4 = arith.constant 9.99999974E-6 : f32
    %12 = vector.broadcast %cst_4 : f32 to vector<8x1xf32>
    %13 = arith.addf %11, %12 : vector<8x1xf32>
    %14 = math.rsqrt %13 : vector<8x1xf32>
    %c0_5 = arith.constant 0 : index
    %c0_6 = arith.constant 0 : index
    %15 = vector.load %arg2[%c0_5, %c0_6] : memref<8x2xf32, #tpu.memory_space<vmem>>, vector<8x2xf32>
    %16 = vector.extract_strided_slice %15 {offsets = [0, 0], sizes = [8, 1], strides = [1, 1]} : vector<8x2xf32> to vector<8x1xf32>
    %17 = arith.mulf %14, %16 : vector<8x1xf32>
    %18 = vector.extract_strided_slice %15 {offsets = [0, 1], sizes = [8, 1], strides = [1, 1]} : vector<8x2xf32> to vector<8x1xf32>
    %19 = arith.mulf %4, %17 : vector<8x1xf32>
    %20 = arith.subf %18, %19 : vector<8x1xf32>
    %21 = vector.broadcast %17 : vector<8x1xf32> to vector<8x256xf32>
    %22 = arith.mulf %0, %21 : vector<8x256xf32>
    %23 = vector.broadcast %20 : vector<8x1xf32> to vector<8x256xf32>
    %24 = arith.addf %22, %23 : vector<8x256xf32>
    %c0_7 = arith.constant 0 : index
    %c0_8 = arith.constant 0 : index
    %25 = vector.load %arg3[%c0_7, %c0_8] : memref<8x256xf32, #tpu.memory_space<vmem>>, vector<8x256xf32>
    tpu.vector_store %arg3[%c0_7, %c0_8], %24 {strides = array<i32>} : memref<8x256xf32, #tpu.memory_space<vmem>>, vector<8x256xf32>,
    return
  }
  func.func @transform_0(%arg0: i32) -> (i32, i32) {
    %c0_i32 = arith.constant 0 : i32
    %c0_i32_0 = arith.constant 0 : i32
    return %arg0, %c0_i32 : i32, i32
  }
  func.func @transform_1(%arg0: i32) -> (i32, i32) {
    %c0_i32 = arith.constant 0 : i32
    %c0_i32_0 = arith.constant 0 : i32
    return %arg0, %c0_i32 : i32, i32
  }
  func.func @transform_2(%arg0: i32) -> (i32, i32) {
    %c0_i32 = arith.constant 0 : i32
    %c0_i32_0 = arith.constant 0 : i32
    return %arg0, %c0_i32 : i32, i32
  }
}

</mosaic_0001>

<bundles_post_ra>
// kernel: tpu_custom_call.1
= control target key start
LH: loop header
LB: loop body
LE: loop exit
PB: predicated region body
PF: predicated region fallthrough
CT: control target
= control target key end

     0   :  { %7 = vsyncpa [#allocation3], 0  ;;  %s183_s0 = inlined_call_operand.hbm [shape: f32[8,256], index: 0, kind: input, shape index: {}]   ;;  %s184_s1 = inlined_call_operand.vmem [shape: f32[8,2], index: 1, kind: input, shape index: {}]   ;;  %s185_s2 = inlined_call_operand.hbm [shape: f32[8,256], index: 2, kind: output, shape index: {}]  }
   0x1   :  { %8 = vsyncpa [#allocation4], 0  ;;  %s14_s11 = sshll.u32 %s183_s0, 4  ;;  %s154_s12 = smov [#allocation2]   ;;  %s15_s11 = int_to_ptr.hbm [resolvable:$true] %s14_s11 }
   0x2   :  { %s16_s13 = sshll.u32 %s154_s12, 4  ;;  %s17_s13 = int_to_ptr.vmem [resolvable:$true] %s16_s13 }
   0x3   :  { %19 = dma.hbm_to_vmem [thread:$0]  %s15_s11, 256, %s17_s13, [#allocation3]  }
   0x4   :  { %150 = dma.done.wait [#allocation3], 256  }
   0x5   :  { %151 = vsyncadd [#allocation3], 4294967040  ;;  %v26_v0 = vld [vmem:[#allocation2] sm:$0xff]  ;;  %v27_v1 = vld [vmem:[#allocation2 + $0x8] sm:$0xff]  ;;  %v155_v10 = vmov 0   ;;  %s156_s15 = smov 1  }
   0x6   :  { %v28_v2 = vadd.f32 %v27_v1, %v26_v0  ;;  %97 = vset.pattern.permute.xlu1 %v155_v10  ;;  %v51_v20 = vld [vmem:[%s184_s1] sm:$0xff]  ;;  %v157_v24 = vmov 1   ;;  %s158_s16 = smov [#allocation5]   ;;  %s82_s19 = sshll.u32 %s185_s2, 4  ;;  %s83_s19 = int_to_ptr.hbm [resolvable:$true] %s82_s19 }
   0x7   :  { %98 = vset.pattern.permute.xlu2 %v157_v24  ;;  %99 = vset.pattern.permute.xlu0 %v157_v24  ;;  %s80_s17 = sshll.u32 %s158_s16, 4  ;;  %s81_s17 = int_to_ptr.vmem [resolvable:$true] %s80_s17 }
   0x8   :  { %29 = vadd.xlane.f32.xlu0 %v28_v2 }
  0x7b   :  { %v30_v3 = vpop.xlane.xlu0 %29 }
  0x7c   :  { %v31_v4 = vmul.f32 0.00390625, %v30_v3 }
  0x7e   :  { %v32_v5 = vsub.f32 %v26_v0, %v31_v4  ;;  %v33_v6 = vsub.f32 %v27_v1, %v31_v4 }
  0x80   :  { %v34_v7 = vmul.f32 %v32_v5, %v32_v5  ;;  %v35_v8 = vmul.f32 %v33_v6, %v33_v6 }
  0x82   :  { %v36_v9 = vadd.f32 %v35_v8, %v34_v7 }
  0x84   :  { %37 = vadd.xlane.f32.xlu0 %v36_v9 }
  0xf7   :  { %v38_v11 = vpop.xlane.xlu0 %37 }
  0xf8   :  { %v39_v12 = vmul.f32 0.00390625, %v38_v11 }
  0xfa   :  { %v40_v13 = vadd.f32 1e-05, %v39_v12 }
  0xfc   :  { %100 = vrsqrt.f32 %v40_v13  ;;  %vm47_vm1 = vweird.f32 %v40_v13 }
 0x102   :  { %v101_v14 = vpop.eup %100 }
 0x103   :  { %v42_v15 = vmul.f32 %v101_v14, %v40_v13  ;;  %vm48_vm0 = vweird.f32 %v101_v14 }
 0x104   :  { %vm49_vm2 = vmor %vm47_vm1, %vm48_vm0 }
 0x105   :  { %v43_v16 = vmul.f32 %v101_v14, %v42_v15 }
 0x107   :  { %v44_v17 = vmul.f32 0.5, %v43_v16 }
 0x109   :  { %v45_v18 = vsub.f32 1.5, %v44_v17 }
 0x10b   :  { %v46_v19 = vmul.f32 %v101_v14, %v45_v18 }
 0x10d   :  { %v50_v21 = vsel %vm49_vm2, %v101_v14, %v46_v19 }
 0x10e   :  { %v52_v22 = vmul.f32 %v51_v20, %v50_v21 }
 0x110   :  { %v53_v23 = vmul.f32 %v52_v22, %v31_v4 }
 0x112   :  { %55 = vrot.lane.b32.xlu1 %v53_v23, %s156_s15 }
 0x11a   :  { %61 = vperm.xlu1 %97, %v52_v22  }
 0x184   :  { %v56_v25 = vpop.permute.xlu1 %55 }
 0x185   :  { %v58_v26 = vsub.f32 %v51_v20, %v56_v25 }
 0x187   :  { %68 = vperm.xlu2 %98, %v58_v26  }
 0x18c   :  { %v62_v27 = vpop.permute.xlu1 %61 }
 0x18d   :  { %v64_v28 = vmul.f32 %v62_v27, %v26_v0  ;;  %v65_v29 = vmul.f32 %v62_v27, %v27_v1 }
 0x1e1   :  { %v69_v30 = vpop.permute.xlu2 %68 }
 0x1e2   :  { %v71_v31 = vadd.f32 %v69_v30, %v64_v28  ;;  %v72_v32 = vadd.f32 %v69_v30, %v65_v29 }
 0x1e4   :  { %73 = vst [vmem:[#allocation5] sm:$0xff] %v71_v31 }
 0x1e5   :  { %74 = vst [vmem:[#allocation5 + $0x8] sm:$0xff] %v72_v32 }
 0x1e6   :  { %85 = dma.vmem_to_hbm [thread:$0]  %s81_s17, 256, %s83_s19, [#allocation4]  }
 0x1e7   :  { %152 = dma.done.wait [#allocation4], 256  }
 0x1e8   :  { %153 = vsyncadd [#allocation4], 4294967040 }
 0x1e9   :  { %90 = vsyncpa [#allocation3], 1 }
 0x1ea   :  { %91 = vsyncpa [#allocation4], 1 }

</bundles_post_ra>
